<compile_context>
chip_gen: v5e
topology: v5e:2x2
jax: 0.10.0
libtpu: 0.0.40
codegen_flags: <defaults>
</compile_context>

<pallas_src>
import functools

import jax
import jax.numpy as jnp
from jax.experimental import pallas as pl
from jax.experimental.pallas import tpu as pltpu

_LANE = 128              # pad hidden/output dims to multiples of this
_ROW_ALIGN = 256         # row-tile alignment (clean MXU M passes, bf16-friendly)
_X_TILE_BYTES = 2 << 20  # target f32 x bytes per grid step
_MAX_TILE_M = 8192       # cap so (tile_m, h_pad) f32 intermediates fit VMEM


def _round_up(x: int, m: int) -> int:
    return ((x + m - 1) // m) * m


def _is_multi_tc_chip() -> bool:
    """True on chips with >1 TensorCore per chip (v7x); v2-v6 are single-TC."""
    try:
        kind = jax.devices()[0].device_kind.lower()
    except Exception:
        return False
    return "v7" in kind


def _pick_tile_m(n: int, f: int) -> int:
    """Row tile sized by bytes; 256-aligned; 2-way split only on multi-TC chips."""
    rows = max(_ROW_ALIGN,
               (_X_TILE_BYTES // max(1, 4 * f)) // _ROW_ALIGN * _ROW_ALIGN)
    rows = min(rows, _MAX_TILE_M)
    if _is_multi_tc_chip():
        # Keep >= 2 grid steps so both v7x TensorCores get work on the
        # "parallel" axis, but never below one aligned tile.
        rows = min(rows, max(_ROW_ALIGN, _round_up(pl.cdiv(n, 2), _ROW_ALIGN)))
    if rows >= n:
        return n     # single full-extent block (always layout-legal)
    return rows      # multiple of 256 -> divisible by 8/16


def _vmem_limit_bytes(tile_m: int, f: int, h_pad: int, o_pad: int) -> int:
    """Derive the scoped-VMEM request from actual buffer sizes (with headroom)."""
    x_buf = 2 * tile_m * f * 4                    # f32 x, double-buffered
    out_buf = 2 * tile_m * o_pad * 4              # f32 out, double-buffered
    w_buf = 2 * 2 * (f * h_pad + h_pad * h_pad + h_pad * o_pad)   # bf16 weights
    b_buf = 2 * 4 * (2 * h_pad + o_pad)           # f32 biases
    act_buf = 2 * tile_m * h_pad * 4              # two f32 intermediates
    need = 2 * (x_buf + out_buf + w_buf + b_buf + act_buf) + (8 << 20)
    # v7x has 64 MiB physical VMEM per TC; v5e/v6e have 128 MiB.
    cap = (56 << 20) if _is_multi_tc_chip() else (96 << 20)
    return int(max(32 << 20, min(need, cap)))


def _resident_spec(shape, nbytes):
    # Weights/biases are resident (constant index_map). Single-buffer them only
    # when the block is big enough to matter for VMEM headroom (v7x: 64 MiB);
    # small blocks keep the default double-buffering for portability.
    if nbytes >= (2 << 20):
        return pl.BlockSpec(shape, lambda i: (0, 0), pipeline_mode=pl.Buffered(1))
    return pl.BlockSpec(shape, lambda i: (0, 0))


def _ffn_kernel(x_ref, w1_ref, b1_ref, w2_ref, b2_ref, w3_ref, b3_ref, o_ref):
    # 3 chained matmuls: bf16 MXU inputs, f32 accumulation, f32 activations.
    x = x_ref[...].astype(jnp.bfloat16)    # VPU cast, hidden under DMA/MXU slack
    h = jnp.dot(x, w1_ref[...], preferred_element_type=jnp.float32) + b1_ref[...]
    h = jnp.maximum(h, 0.0)
    h = jnp.dot(h.astype(jnp.bfloat16), w2_ref[...],
                preferred_element_type=jnp.float32) + b2_ref[...]
    h = jnp.maximum(h, 0.0)
    out = jnp.dot(h.astype(jnp.bfloat16), w3_ref[...],
                  preferred_element_type=jnp.float32) + b3_ref[...]
    o_ref[...] = out.astype(o_ref.dtype)   # full lane-dense (tile_m, o_pad) store


@functools.partial(jax.jit, static_argnames=("tile_m",))
def _ffn_pallas(x, w1, b1, w2, b2, w3, b3, *, tile_m):
    n, f = x.shape
    h = w1.shape[1]
    o = w3.shape[1]
    h_pad = _round_up(h, _LANE)
    o_pad = _round_up(o, _LANE)

    # Zero-pad hidden/output dims to lane multiples. Numerically inert: padded
    # W columns + zero bias -> ReLU(0)=0 -> padded W rows contribute nothing,
    # and padded output columns are exactly zero (sliced off below).
    w1p = jnp.pad(w1, ((0, 0), (0, h_pad - h))).astype(jnp.bfloat16)
    b1p = jnp.pad(b1.astype(jnp.float32), ((0, 0), (0, h_pad - h)))
    w2p = jnp.pad(w2, ((0, h_pad - h), (0, h_pad - h))).astype(jnp.bfloat16)
    b2p = jnp.pad(b2.astype(jnp.float32), ((0, 0), (0, h_pad - h)))
    w3p = jnp.pad(w3, ((0, h_pad - h), (0, o_pad - o))).astype(jnp.bfloat16)
    b3p = jnp.pad(b3.astype(jnp.float32), ((0, 0), (0, o_pad - o)))

    grid = (pl.cdiv(n, tile_m),)   # ragged last block: OOB rows masked on store

    flops = 2 * n * (f * h_pad + h_pad * h_pad + h_pad * o_pad)
    bytes_accessed = (
        n * f * 4                                              # x (f32)
        + (f * h_pad + h_pad * h_pad + h_pad * o_pad) * 2      # weights (bf16)
        + (2 * h_pad + o_pad) * 4                              # biases (f32)
        + n * o_pad * 4)                                       # output (f32)

    in_specs = [
        pl.BlockSpec((tile_m, f), lambda i: (i, 0)),           # x rows, pipelined
        _resident_spec((f, h_pad), 2 * f * h_pad),             # W1^T (resident)
        _resident_spec((1, h_pad), 4 * h_pad),                 # b1
        _resident_spec((h_pad, h_pad), 2 * h_pad * h_pad),     # W2^T
        _resident_spec((1, h_pad), 4 * h_pad),                 # b2
        _resident_spec((h_pad, o_pad), 2 * h_pad * o_pad),     # W3^T
        _resident_spec((1, o_pad), 4 * o_pad),                 # b3
    ]
    out_spec = pl.BlockSpec((tile_m, o_pad), lambda i: (i, 0))  # lane-dense stores

    out = pl.pallas_call(
        _ffn_kernel,
        out_shape=jax.ShapeDtypeStruct((n, o_pad), jnp.float32),
        grid_spec=pltpu.PrefetchScalarGridSpec(
            num_scalar_prefetch=0,
            grid=grid,
            in_specs=in_specs,
            out_specs=out_spec,
        ),
        compiler_params=pltpu.CompilerParams(
            dimension_semantics=("parallel",),
            vmem_limit_bytes=_vmem_limit_bytes(tile_m, f, h_pad, o_pad),
        ),
        cost_estimate=pl.CostEstimate(
            flops=flops, transcendentals=0, bytes_accessed=bytes_accessed),
    )(x, w1p, b1p, w2p, b2p, w3p, b3p)
    return out[:, :o]


def ffn_atom_forward(a_hidden, w1, b1, w2, b2, w3, b3):
    """Dense-layer stack over a_hidden rows. Returns output WITH the padding row."""
    n, f = a_hidden.shape
    tile_m = _pick_tile_m(n, f)
    return _ffn_pallas(a_hidden.astype(jnp.float32),
                       w1, b1, w2, b2, w3, b3, tile_m=tile_m)


def ffn_forward(inputs, params):
    """FFN.forward for ffn_type='atom', constraint=None, attention=False."""
    a_hidden, a_scope, b_hidden, b_scope, b2br, bond_types = inputs
    del a_scope, b_hidden, b_scope, b2br, bond_types  # unused on this path
    w1, b1, w2, b2, w3, b3 = params
    output = ffn_atom_forward(a_hidden, w1, b1, w2, b2, w3, b3)
    return output[1:]  # drop chemprop's zero padding row


def _reference(a_hidden, params):
    # Same math as the kernel: bf16 matmul inputs, f32 accumulation/activations.
    w1, b1, w2, b2, w3, b3 = params

    def lin(x, w, b):
        return jnp.dot(x.astype(jnp.bfloat16), w.astype(jnp.bfloat16),
                       preferred_element_type=jnp.float32) + b

    h = jnp.maximum(lin(a_hidden, w1, b1), 0.0)
    h = jnp.maximum(lin(h, w2, b2), 0.0)
    return lin(h, w3, b3)


if __name__ == "__main__":
    # Small shapes consistent with the module.
    num_atoms = 16          # includes the zero padding row at index 0
    features_size = 32
    hidden_size = 32
    output_size = 8
    # dropout -> identity (eval mode); activation -> ReLU; num_layers = 3.

    key = jax.random.PRNGKey(0)
    k = jax.random.split(key, 8)

    a_hidden = jax.random.normal(k[0], (num_atoms, features_size), jnp.float32)
    a_hidden = a_hidden.at[0].set(0.0)  # chemprop padding row

    # PyTorch Linear weights are (out, in); stored pre-transposed to (in, out).
    w1 = jax.random.normal(k[1], (features_size, hidden_size), jnp.float32) * 0.1
    b1 = jax.random.normal(k[2], (1, hidden_size), jnp.float32) * 0.1
    w2 = jax.random.normal(k[3], (hidden_size, hidden_size), jnp.float32) * 0.1
    b2 = jax.random.normal(k[4], (1, hidden_size), jnp.float32) * 0.1
    w3 = jax.random.normal(k[5], (hidden_size, output_size), jnp.float32) * 0.1
    b3 = jax.random.normal(k[6], (1, output_size), jnp.float32) * 0.1
    params = (w1, b1, w2, b2, w3, b3)

    # Unused tuple members of FFN.forward's input, built for API fidelity.
    a_scope = [(1, num_atoms - 1)]
    b_hidden = jnp.zeros((4, features_size), jnp.float32)
    b_scope = [(1, 3)]
    b2br = jnp.zeros((3, 2), jnp.int32)
    bond_types = jnp.zeros((3,), jnp.float32)
    # TODO(synk): 'bond' ffn_type (gather/concat of bond features) and the
    # constraint / attention branches (per-molecule data-dependent scope loop)
    # are not implemented in the kernel; only the atom / no-constraint path is.

    inputs = (a_hidden, a_scope, b_hidden, b_scope, b2br, bond_types)
    out = ffn_forward(inputs, params)
    out = jax.block_until_ready(out)

    ref = _reference(a_hidden, params)[1:]
    assert out.shape == (num_atoms - 1, output_size)
    assert jnp.allclose(out, ref, atol=1e-2, rtol=1e-2), (
        float(jnp.max(jnp.abs(out - ref))))

    # Also exercise the ragged / non-aligned row-count path at a larger n.
    n2 = 137
    a2 = jax.random.normal(k[7], (n2, features_size), jnp.float32)
    out2 = jax.block_until_ready(ffn_atom_forward(a2, *params))
    ref2 = _reference(a2, params)
    assert out2.shape == (n2, output_size)
    assert jnp.allclose(out2, ref2, atol=1e-2, rtol=1e-2), (
        float(jnp.max(jnp.abs(out2 - ref2))))

    print("KERNEL_OK")
</pallas_src>

<mosaic_0001>
module attributes {stable_mosaic.version = 11 : i64} {
  func.func @_ffn_kernel(%arg0: i32, %arg1: memref<16x32xf32, #tpu.memory_space<vmem>>, %arg2: memref<32x128xbf16, #tpu.memory_space<vmem>>, %arg3: memref<1x128xf32, #tpu.memory_space<vmem>>, %arg4: memref<128x128xbf16, #tpu.memory_space<vmem>>, %arg5: memref<1x128xf32, #tpu.memory_space<vmem>>, %arg6: memref<128x128xbf16, #tpu.memory_space<vmem>>, %arg7: memref<1x128xf32, #tpu.memory_space<vmem>>, %arg8: memref<16x128xf32, #tpu.memory_space<vmem>>) attributes {dimension_semantics = [#tpu.dimension_semantics<parallel>], iteration_bounds = array<i64: 1>, scalar_prefetch = 0 : i64, scratch_operands = 0 : i64, tpu.core_type = #tpu.core_type<tc>, window_params = [{transform_indices = @transform_0, window_bounds = array<i64: 16, 32>}, {pipeline_mode = #tpu.pipeline_mode<synchronous>, transform_indices = @transform_1, window_bounds = array<i64: 32, 128>}, {pipeline_mode = #tpu.pipeline_mode<synchronous>, transform_indices = @transform_2, window_bounds = array<i64: 1, 128>}, {pipeline_mode = #tpu.pipeline_mode<synchronous>, transform_indices = @transform_3, window_bounds = array<i64: 128, 128>}, {pipeline_mode = #tpu.pipeline_mode<synchronous>, transform_indices = @transform_4, window_bounds = array<i64: 1, 128>}, {pipeline_mode = #tpu.pipeline_mode<synchronous>, transform_indices = @transform_5, window_bounds = array<i64: 128, 128>}, {pipeline_mode = #tpu.pipeline_mode<synchronous>, transform_indices = @transform_6, window_bounds = array<i64: 1, 128>}, {transform_indices = @transform_7, window_bounds = array<i64: 16, 128>}]} {
    %c0 = arith.constant 0 : index
    %c0_0 = arith.constant 0 : index
    %0 = vector.load %arg1[%c0, %c0_0] : memref<16x32xf32, #tpu.memory_space<vmem>>, vector<16x32xf32>
    %1 = arith.truncf %0 : vector<16x32xf32> to vector<16x32xbf16>
    %c0_1 = arith.constant 0 : index
    %c0_2 = arith.constant 0 : index
    %2 = vector.load %arg2[%c0_1, %c0_2] : memref<32x128xbf16, #tpu.memory_space<vmem>>, vector<32x128xbf16>
    %cst = arith.constant dense<0.000000e+00> : vector<16x128xf32>
    %3 = tpu.matmul %1, %2, %cst {dimension_numbers = #tpu.dot_dimension_numbers<[1], [0], [0], [1], [0, 0, 1, 1], [], []>} : vector<16x32xbf16>, vector<32x128xbf16>, vector<16x128xf32> -> vector<16x128xf32>
    %c0_3 = arith.constant 0 : index
    %c0_4 = arith.constant 0 : index
    %4 = vector.load %arg3[%c0_3, %c0_4] : memref<1x128xf32, #tpu.memory_space<vmem>>, vector<1x128xf32>
    %5 = vector.broadcast %4 : vector<1x128xf32> to vector<16x128xf32>
    %6 = arith.addf %3, %5 : vector<16x128xf32>
    %cst_5 = arith.constant 0.000000e+00 : f32
    %7 = vector.broadcast %cst_5 : f32 to vector<16x128xf32>
    %8 = arith.maximumf %6, %7 : vector<16x128xf32>
    %9 = arith.truncf %8 : vector<16x128xf32> to vector<16x128xbf16>
    %c0_6 = arith.constant 0 : index
    %c0_7 = arith.constant 0 : index
    %10 = vector.load %arg4[%c0_6, %c0_7] : memref<128x128xbf16, #tpu.memory_space<vmem>>, vector<128x128xbf16>
    %cst_8 = arith.constant dense<0.000000e+00> : vector<16x128xf32>
    %11 = tpu.matmul %9, %10, %cst_8 {dimension_numbers = #tpu.dot_dimension_numbers<[1], [0], [0], [1], [0, 0, 1, 1], [], []>} : vector<16x128xbf16>, vector<128x128xbf16>, vector<16x128xf32> -> vector<16x128xf32>
    %c0_9 = arith.constant 0 : index
    %c0_10 = arith.constant 0 : index
    %12 = vector.load %arg5[%c0_9, %c0_10] : memref<1x128xf32, #tpu.memory_space<vmem>>, vector<1x128xf32>
    %13 = vector.broadcast %12 : vector<1x128xf32> to vector<16x128xf32>
    %14 = arith.addf %11, %13 : vector<16x128xf32>
    %cst_11 = arith.constant 0.000000e+00 : f32
    %15 = vector.broadcast %cst_11 : f32 to vector<16x128xf32>
    %16 = arith.maximumf %14, %15 : vector<16x128xf32>
    %17 = arith.truncf %16 : vector<16x128xf32> to vector<16x128xbf16>
    %c0_12 = arith.constant 0 : index
    %c0_13 = arith.constant 0 : index
    %18 = vector.load %arg6[%c0_12, %c0_13] : memref<128x128xbf16, #tpu.memory_space<vmem>>, vector<128x128xbf16>
    %cst_14 = arith.constant dense<0.000000e+00> : vector<16x128xf32>
    %19 = tpu.matmul %17, %18, %cst_14 {dimension_numbers = #tpu.dot_dimension_numbers<[1], [0], [0], [1], [0, 0, 1, 1], [], []>} : vector<16x128xbf16>, vector<128x128xbf16>, vector<16x128xf32> -> vector<16x128xf32>
    %c0_15 = arith.constant 0 : index
    %c0_16 = arith.constant 0 : index
    %20 = vector.load %arg7[%c0_15, %c0_16] : memref<1x128xf32, #tpu.memory_space<vmem>>, vector<1x128xf32>
    %21 = vector.broadcast %20 : vector<1x128xf32> to vector<16x128xf32>
    %22 = arith.addf %19, %21 : vector<16x128xf32>
    %c0_17 = arith.constant 0 : index
    %c0_18 = arith.constant 0 : index
    %23 = vector.load %arg8[%c0_17, %c0_18] : memref<16x128xf32, #tpu.memory_space<vmem>>, vector<16x128xf32>
    tpu.vector_store %arg8[%c0_17, %c0_18], %22 {strides = array<i32>} : memref<16x128xf32, #tpu.memory_space<vmem>>, vector<16x128xf32>,
    return
  }
  func.func @transform_0(%arg0: i32) -> (i32, i32) {
    %c0_i32 = arith.constant 0 : i32
    %c0_i32_0 = arith.constant 0 : i32
    return %arg0, %c0_i32 : i32, i32
  }
  func.func @transform_1(%arg0: i32) -> (i32, i32) {
    %c0_i32 = arith.constant 0 : i32
    %c0_i32_0 = arith.constant 0 : i32
    %c0_i32_1 = arith.constant 0 : i32
    return %c0_i32, %c0_i32_0 : i32, i32
  }
  func.func @transform_2(%arg0: i32) -> (i32, i32) {
    %c0_i32 = arith.constant 0 : i32
    %c0_i32_0 = arith.constant 0 : i32
    %c0_i32_1 = arith.constant 0 : i32
    return %c0_i32, %c0_i32_0 : i32, i32
  }
  func.func @transform_3(%arg0: i32) -> (i32, i32) {
    %c0_i32 = arith.constant 0 : i32
    %c0_i32_0 = arith.constant 0 : i32
    %c0_i32_1 = arith.constant 0 : i32
    return %c0_i32, %c0_i32_0 : i32, i32
  }
  func.func @transform_4(%arg0: i32) -> (i32, i32) {
    %c0_i32 = arith.constant 0 : i32
    %c0_i32_0 = arith.constant 0 : i32
    %c0_i32_1 = arith.constant 0 : i32
    return %c0_i32, %c0_i32_0 : i32, i32
  }
  func.func @transform_5(%arg0: i32) -> (i32, i32) {
    %c0_i32 = arith.constant 0 : i32
    %c0_i32_0 = arith.constant 0 : i32
    %c0_i32_1 = arith.constant 0 : i32
    return %c0_i32, %c0_i32_0 : i32, i32
  }
  func.func @transform_6(%arg0: i32) -> (i32, i32) {
    %c0_i32 = arith.constant 0 : i32
    %c0_i32_0 = arith.constant 0 : i32
    %c0_i32_1 = arith.constant 0 : i32
    return %c0_i32, %c0_i32_0 : i32, i32
  }
  func.func @transform_7(%arg0: i32) -> (i32, i32) {
    %c0_i32 = arith.constant 0 : i32
    %c0_i32_0 = arith.constant 0 : i32
    return %arg0, %c0_i32 : i32, i32
  }
}

</mosaic_0001>

<bundles_post_ra>
// kernel: _ffn_pallas.1
= control target key start
LH: loop header
LB: loop body
LE: loop exit
PB: predicated region body
PF: predicated region fallthrough
CT: control target
= control target key end

     0   :  { %vm50_vm0 = vcmask 261120   ;;  %s453_s1 = inlined_call_operand.vmem [shape: bf16[32,128], index: 1, kind: input, shape index: {}]   ;;  %s454_s0 = inlined_call_operand.vmem [shape: f32[16,32], index: 0, kind: input, shape index: {}]   ;;  %s455_s3 = inlined_call_operand.vmem [shape: bf16[128,128], index: 3, kind: input, shape index: {}]   ;;  %s456_s2 = inlined_call_operand.vmem [shape: f32[1,128], index: 2, kind: input, shape index: {}]   ;;  %s457_s4 = inlined_call_operand.vmem [shape: f32[1,128], index: 4, kind: input, shape index: {}]   ;;  %s458_s5 = inlined_call_operand.vmem [shape: bf16[128,128], index: 5, kind: input, shape index: {}]   ;;  %s459_s6 = inlined_call_operand.vmem [shape: f32[1,128], index: 6, kind: input, shape index: {}]   ;;  %s460_s7 = inlined_call_operand.vmem [shape: f32[16,128], index: 7, kind: output, shape index: {}]  }
   0x1   :  { %v318_v0 = vld [vmem:[%s453_s1 + $0x8] sm:$0xff]  ;;  %v317_v1 = vld [vmem:[%s453_s1] sm:$0xff]  ;;  %v326_v2 = vld [vmem:[%s455_s3 + $0x38] sm:$0xff] }
   0x2   :  { %60 = vmatpush.bf16.msra.mxu0 %v318_v0  ;;  %v27_v3 = vld [vmem:[%s454_s0] sm:$0xff]  ;;  %v28_v4 = vld [vmem:[%s454_s0 + $0x8] sm:$0xff]  ;;  %139 = vmatpush.bf16.msra.mxu1 %v326_v2  ;;  %v325_v5 = vld [vmem:[%s455_s3 + $0x30] sm:$0xff] }
   0x3   :  { %v29_v6 = vpack.c.bf16 %v28_v4, %v27_v3  ;;  %v324_v7 = vld [vmem:[%s455_s3 + $0x28] sm:$0xff]  ;;  %v323_v8 = vld [vmem:[%s455_s3 + $0x20] sm:$0xff]  ;;  %v322_v9 = vld [vmem:[%s455_s3 + $0x18] sm:$0xff] }
   0x4   :  { %v321_v10 = vld [vmem:[%s455_s3 + $0x10] sm:$0xff]  ;;  %v320_v11 = vld [vmem:[%s455_s3 + $0x8] sm:$0xff]  ;;  %v319_v12 = vld [vmem:[%s455_s3] sm:$0xff] }
   0x5   :  { %v334_v13 = vld [vmem:[%s458_s5 + $0x38] sm:$0xff]  ;;  %v333_v14 = vld [vmem:[%s458_s5 + $0x30] sm:$0xff]  ;;  %v332_v15 = vld [vmem:[%s458_s5 + $0x28] sm:$0xff] }
   0x6   :  { %61 = vmatpush.bf16.msra.mxu0 %v317_v1  ;;  %140 = vmatpush.bf16.msra.mxu1 %v325_v5  ;;  %v331_v16 = vld [vmem:[%s458_s5 + $0x20] sm:$0xff]  ;;  %v330_v25 = vld [vmem:[%s458_s5 + $0x18] sm:$0xff]  ;;  %v329_v26 = vld [vmem:[%s458_s5 + $0x10] sm:$0xff] }
   0x7   :  { %224 = vmatpush.bf16.msra.mxu2 %v334_v13  ;;  %v335_v18 = vld [vmem:[%s456_s2] ss:$0 sm:$0xff]  ;;  %v328_v27 = vld [vmem:[%s458_s5 + $0x8] sm:$0xff] }
   0x8   :  { %v327_v28 = vld [vmem:[%s458_s5] sm:$0xff] }
   0x9   :  { %252 = vmatmul.msk.bf16.vlgmr.msra.gmra.mxu0 %vm50_vm0, %v29_v6  ;;  %v336_v30 = vld [vmem:[%s457_s4] ss:$0 sm:$0xff] }
   0xa   :  { %141 = vmatpush.bf16.msra.mxu1 %v324_v7  ;;  %v337_v37 = vld [vmem:[%s459_s6] ss:$0 sm:$0xff] }
   0xb   :  { %225 = vmatpush.bf16.msra.mxu2 %v333_v14 }
   0xe   :  { %142 = vmatpush.bf16.msra.mxu1 %v323_v8 }
   0xf   :  { %226 = vmatpush.bf16.msra.mxu2 %v332_v15 }
  0x12   :  { %143 = vmatpush.bf16.msra.mxu1 %v322_v9 }
  0x13   :  { %227 = vmatpush.bf16.msra.mxu2 %v331_v16 }
  0x16   :  { %144 = vmatpush.bf16.msra.mxu1 %v321_v10 }
  0x17   :  { %228 = vmatpush.bf16.msra.mxu2 %v330_v25 }
  0x1a   :  { %145 = vmatpush.bf16.msra.mxu1 %v320_v11 }
  0x1b   :  { %229 = vmatpush.bf16.msra.mxu2 %v329_v26 }
  0x1e   :  { %146 = vmatpush.bf16.msra.mxu1 %v319_v12 }
  0x1f   :  { %230 = vmatpush.bf16.msra.mxu2 %v328_v27 }
  0x23   :  { %231 = vmatpush.bf16.msra.mxu2 %v327_v28 }
  0x86   :  { %v63_v17 = vpop.f32.mrf.mxu0 }
  0x87   :  { %v64_v19 = vadd.f32 %v335_v18, %v63_v17 }
  0x89   :  { %v68_v22 = vmax.f32 %v64_v19, 0.0 }
  0x8e   :  { %v65_v20 = vpop.f32.mrf.mxu0 }
  0x8f   :  { %v66_v21 = vadd.f32 %v335_v18, %v65_v20 }
  0x91   :  { %v69_v23 = vmax.f32 %v66_v21, 0.0 }
  0x93   :  { %v70_v24 = vpack.c.bf16 %v69_v23, %v68_v22 }
  0x95   :  { %147 = vmatmul.bf16.vlgmr.msra.gmra.mxu1 %v70_v24 }
 0x112   :  { %v148_v29 = vpop.f32.mrf.mxu1 }
 0x113   :  { %v149_v31 = vadd.f32 %v336_v30, %v148_v29 }
 0x115   :  { %v153_v34 = vmax.f32 %v149_v31, 0.0 }
 0x11a   :  { %v150_v32 = vpop.f32.mrf.mxu1 }
 0x11b   :  { %v151_v33 = vadd.f32 %v336_v30, %v150_v32 }
 0x11d   :  { %v154_v35 = vmax.f32 %v151_v33, 0.0 }
 0x11f   :  { %v155_v36 = vpack.c.bf16 %v154_v35, %v153_v34 }
 0x121   :  { %232 = vmatmul.bf16.vlgmr.msra.gmra.mxu2 %v155_v36 }
 0x1a4   :  { %v233_v38 = vpop.f32.mrf.mxu2 }
 0x1a5   :  { %v234_v39 = vadd.f32 %v337_v37, %v233_v38 }
 0x1a7   :  { %238 = vst [vmem:[%s460_s7] sm:$0xff] %v234_v39 }
 0x1ac   :  { %v235_v40 = vpop.f32.mrf.mxu2 }
 0x1ad   :  { %v236_v41 = vadd.f32 %v337_v37, %v235_v40 }
 0x1af   :  { %239 = vst [vmem:[%s460_s7 + $0x8] sm:$0xff] %v236_v41 }

</bundles_post_ra>
